<compile_context>
chip_gen: v6e
topology: v6e:2x2x1
jax: 0.10.0
libtpu: 0.0.40
codegen_flags: <defaults>
</compile_context>

<pallas_src>
import jax
import jax.numpy as jnp
from jax.experimental import pallas as pl
from jax.experimental.pallas import tpu as pltpu


def _chomp_copy_kernel(x_ref, o_ref):
    # Input and output tiles share a block shape + identity index_map, so the
    # body is a plain full-tile copy; Pallas masks only the boundary blocks.
    o_ref[...] = x_ref[...]


def _vmem_budget_bytes() -> int:
    """~3/4 of physical VMEM, capped at 96 MiB.

    -> ~96 MiB on v5e/v6e (128 MiB VMEM), ~48 MiB on v7x (64 MiB VMEM).
    Falls back to the v7x-safe 48 MiB if the query is unavailable.
    """
    try:
        cap = pltpu.get_tpu_info().vmem_capacity_bytes
    except Exception:  # pragma: no cover - conservative fallback
        cap = 64 * 1024 * 1024
    return min(96 * 1024 * 1024, (3 * cap) // 4)


def _select_tiles(rows: int, l_out: int, itemsize: int, block_bytes_max: int):
    """Pick (tr, tl): lane-dense (multiple-of-128) L tile, multiple-of-32 row tile."""
    tl_full = pl.cdiv(l_out, 128) * 128      # full-width lane tile
    tr_min = rows if rows < 32 else 32       # sublane-aligned even for int8/fp8

    # Prefer the full-width lane tile (collapses the L grid axis, lane-dense
    # output stores, fewest masked boundary blocks); otherwise shrink to fit.
    if tr_min * tl_full * itemsize <= block_bytes_max:
        tl = tl_full
    else:
        tl = (block_bytes_max // (max(tr_min, 1) * itemsize)) // 128 * 128
        tl = max(128, min(tl, tl_full))

    # Row tile: largest multiple of 32 (or all rows, when few) within budget.
    if rows <= 32:
        tr = rows
    else:
        tr_cap = max(32, block_bytes_max // (tl * itemsize))
        tr = min(rows, max(32, (tr_cap // 32) * 32))

    # v7x megacore: if the whole problem fits one block but there are enough
    # rows, split the row axis so both TensorCores get a block.
    if tr >= rows and tl >= tl_full and rows >= 64:
        tr = max(32, (pl.cdiv(rows, 2) // 32) * 32)

    return tr, tl


def chomp1d(x: jax.Array, chomp_size: int) -> jax.Array:
    """x: (N, C, L) -> (N, C, L - chomp_size); identical to x[:, :, :-chomp_size].

    chomp_size must be > 0 (matching the PyTorch module's intended use).
    """
    assert chomp_size > 0, "chomp_size must be > 0"
    n, c, l = x.shape
    l_out = l - chomp_size
    assert l_out > 0, "chomp_size must be smaller than sequence length"

    rows = n * c
    x2 = x.reshape(rows, l)  # free contiguous reshape
    itemsize = jnp.dtype(x.dtype).itemsize

    budget = _vmem_budget_bytes()
    block_bytes_max = budget // 4  # (in + out) x double-buffered = 4x block bytes
    tr, tl = _select_tiles(rows, l_out, itemsize, block_bytes_max)

    grid = (pl.cdiv(rows, tr), pl.cdiv(l_out, tl))

    out2 = pl.pallas_call(
        _chomp_copy_kernel,
        out_shape=jax.ShapeDtypeStruct((rows, l_out), x.dtype),
        grid=grid,
        in_specs=[pl.BlockSpec((tr, tl), lambda i, j: (i, j))],
        out_specs=pl.BlockSpec((tr, tl), lambda i, j: (i, j)),
        compiler_params=pltpu.CompilerParams(
            dimension_semantics=("parallel", "parallel"),
            vmem_limit_bytes=budget,
        ),
        cost_estimate=pl.CostEstimate(
            flops=0,
            transcendentals=0,
            bytes_accessed=2 * rows * l_out * itemsize,
        ),
    )(x2)

    return out2.reshape(n, c, l_out)


if __name__ == "__main__":
    key = jax.random.PRNGKey(0)

    # Primary test: small shape consistent with the module's forward.
    N, C, L = 2, 4, 16
    chomp_size = 3
    x = jax.random.normal(key, (N, C, L), dtype=jnp.float32)

    out = jax.block_until_ready(chomp1d(x, chomp_size))
    ref = x[:, :, :-chomp_size]
    assert out.shape == (N, C, L - chomp_size), out.shape
    assert out.dtype == x.dtype
    assert jnp.array_equal(out, ref), "Pallas Chomp1d mismatch vs reference slice"

    # Secondary test: rows not a multiple of 8, L not a multiple of 128, bf16 —
    # exercises boundary-block read padding + masked final-column stores.
    k2 = jax.random.PRNGKey(1)
    x2 = jax.random.normal(k2, (3, 5, 200), dtype=jnp.bfloat16)
    out2 = jax.block_until_ready(chomp1d(x2, 7))
    ref2 = x2[:, :, :-7]
    assert out2.shape == ref2.shape and out2.dtype == x2.dtype
    assert jnp.array_equal(out2, ref2), "Pallas Chomp1d mismatch (ragged bf16 case)"

    print("KERNEL_OK")
</pallas_src>

<mosaic_0001>
module attributes {stable_mosaic.version = 11 : i64} {
  func.func @_chomp_copy_kernel(%arg0: i32, %arg1: i32, %arg2: memref<8x128xf32, #tpu.memory_space<vmem>>, %arg3: memref<8x128xf32, #tpu.memory_space<vmem>>) attributes {dimension_semantics = [#tpu.dimension_semantics<parallel>, #tpu.dimension_semantics<parallel>], iteration_bounds = array<i64: 1, 1>, scalar_prefetch = 0 : i64, scratch_operands = 0 : i64, tpu.core_type = #tpu.core_type<tc>, window_params = [{transform_indices = @transform_0, window_bounds = array<i64: 8, 128>}, {transform_indices = @transform_1, window_bounds = array<i64: 8, 128>}]} {
    %c0 = arith.constant 0 : index
    %c0_0 = arith.constant 0 : index
    %0 = vector.load %arg2[%c0, %c0_0] : memref<8x128xf32, #tpu.memory_space<vmem>>, vector<8x128xf32>
    %c0_1 = arith.constant 0 : index
    %c0_2 = arith.constant 0 : index
    %1 = vector.load %arg3[%c0_1, %c0_2] : memref<8x128xf32, #tpu.memory_space<vmem>>, vector<8x128xf32>
    tpu.vector_store %arg3[%c0_1, %c0_2], %0 {strides = array<i32>} : memref<8x128xf32, #tpu.memory_space<vmem>>, vector<8x128xf32>,
    return
  }
  func.func @transform_0(%arg0: i32, %arg1: i32) -> (i32, i32) {
    %c0_i32 = arith.constant 0 : i32
    return %arg0, %arg1 : i32, i32
  }
  func.func @transform_1(%arg0: i32, %arg1: i32) -> (i32, i32) {
    %c0_i32 = arith.constant 0 : i32
    return %arg0, %arg1 : i32, i32
  }
}

</mosaic_0001>

<bundles_post_ra>
// kernel: tpu_custom_call.1
= control target key start
LH: loop header
LB: loop body
LE: loop exit
PB: predicated region body
PF: predicated region fallthrough
CT: control target
= control target key end

     0   :  { %6 = vsyncpa [#allocation3], 0  ;;  %s102_s0 = inlined_call_operand.hbm [shape: f32[8,16], index: 0, kind: input, shape index: {}]   ;;  %s103_s1 = inlined_call_operand.hbm [shape: f32[8,13], index: 1, kind: output, shape index: {}]  }
   0x1   :  { %7 = vsyncpa [#allocation4], 0  ;;  %s84_s6 = smov [#allocation2]  }
   0x2   :  { %s14_s7 = sshll.u32 %s84_s6, 4  ;;  %s15_s7 = int_to_ptr.vmem [resolvable:$true] %s14_s7 }
   0x3   :  { %s48_s8 = scalar_lea.vmem %s15_s7, 128  ;;  %p53_p1 = scmp.lt.s32.totalorder %s15_s7, %s15_s7 }
   0x4   :  { %p49_p0 = scmp.ne.s32.totalorder %s15_s7, %s48_s8  ;;  %p54_p2 = scmp.lt.s32.totalorder %s48_s8, %s48_s8 }
   0x6   :  { %p55_p3 = por %p54_p2, %p53_p1 }
   0x8   :  { %p56_p4 = pnand %p55_p3, %p49_p0 }
   0xa   :  { %59 = shalt.err (!%p56_p4)
}
   0xb   :  { %17 = dma.hbm_to_vmem [thread:$0]  %s102_s0, 128, %s15_s7, [#allocation3]  }
   0xc   :  { %80 = dma.done.wait [#allocation3], 128  }
   0xd   :  { %81 = vsyncadd [#allocation3], 4294967168  ;;  %s85_s11 = smov [#allocation5]   ;;  %v21_v0 = vld [vmem:[#allocation2] sm:$0xff] }
   0xe   :  { %s29_s12 = sshll.u32 %s85_s11, 4  ;;  %22 = vst [vmem:[#allocation5] sm:$0xff] %v21_v0  ;;  %s30_s12 = int_to_ptr.vmem [resolvable:$true] %s29_s12 }
   0xf   :  { %s60_s13 = scalar_lea.vmem %s30_s12, 128  ;;  %p65_p6 = scmp.lt.s32.totalorder %s30_s12, %s30_s12 }
  0x10   :  { %p61_p5 = scmp.ne.s32.totalorder %s30_s12, %s60_s13  ;;  %p66_p7 = scmp.lt.s32.totalorder %s60_s13, %s60_s13 }
  0x12   :  { %p67_p8 = por %p66_p7, %p65_p6 }
  0x14   :  { %p68_p9 = pnand %p67_p8, %p61_p5 }
  0x16   :  { %71 = shalt.err (!%p68_p9)
}
  0x17   :  { %32 = dma.vmem_to_hbm [thread:$0]  %s30_s12, 128, %s103_s1, [#allocation4]  }
  0x18   :  { %82 = dma.done.wait [#allocation4], 128  }
  0x19   :  { %83 = vsyncadd [#allocation4], 4294967168 }
  0x1a   :  { %36 = vsyncpa [#allocation3], 1 }
  0x1b   :  { %37 = vsyncpa [#allocation4], 1 }

</bundles_post_ra>
